<compile_context>
chip_gen: v7x
topology: tpu7x:2x2x1
jax: 0.10.0
libtpu: 0.0.40
codegen_flags: <defaults>
</compile_context>

<pallas_src>
import math

import jax
import jax.numpy as jnp
from jax.experimental import pallas as pl
from jax.experimental.pallas import tpu as pltpu

# Hard-concrete constants from the module __init__.
ZETA = 1.1
GAMMA = -0.1
BETA = 2.0 / 3.0
GAMMA_ZETA_LOGRATIO = -GAMMA / ZETA      # exactly as in the PyTorch module
ZG = ZETA - GAMMA                        # 1.2


def _hc_train_kernel(la_ref, u_ref, z_ref):
    """z = clamp((zeta-gamma)*sigmoid((log(u/(1-u)) + logalpha)/beta) + gamma, 0, 1).

    la_ref: (1, W)  f32 lane-dense-folded logalpha (constant block, fetched once)
    u_ref:  (TM, W) f32 uniforms
    z_ref:  (TM, W) output gates
    """
    u = u_ref[...]
    logit_u = jnp.log(u / (1.0 - u))
    s = jax.nn.sigmoid((logit_u + la_ref[...]) / BETA)
    z_ref[...] = jnp.clip(ZG * s + GAMMA, 0.0, 1.0).astype(z_ref.dtype)


def _fold_factor(p, repeat):
    """Smallest f with (f*p) % 128 == 0 and repeat % f == 0, else 1."""
    if p % 128 == 0:
        return 1
    f = 128 // math.gcd(p, 128)
    if f <= repeat and repeat % f == 0:
        return f
    return 1


def _row_tile(rows, width, out_itemsize):
    """Pick a row tile: ~8 MiB of output per block, >=2 grid steps when rows allow.

    Double-buffered u (f32) + z tiles then stay under ~40 MiB of VMEM, which
    fits v5e/v6e (128 MiB) and v7x (64 MiB) with headroom.
    """
    target_out_bytes = 8 * 1024 * 1024
    tm = max(8, target_out_bytes // max(width * out_itemsize, 1))
    tm = min(tm, rows)
    if rows >= 16 and tm > rows // 2:
        tm = rows // 2                       # guarantee >=2 tiles (v7x megacore)
    if tm < rows:
        tm = max(8, (tm // 8) * 8)           # keep (8,128)-friendly sublane tiling
    else:
        tm = rows                            # full extent: always legal
    return tm


def hard_concrete_sampler(logalpha, repeat, *, key=None, training=True,
                          u=None, out_dtype=jnp.float32):
    """Forward of HardConcreteSampler.

    logalpha: (p,) f32 parameter.
    repeat:   number of samples (rows).
    key:      jax PRNG key used to draw uniforms when u is None.
    u:        optional (repeat, p) uniforms (reproducibility / verification).
    Returns (z (repeat, p) out_dtype, qz (p,) f32).
    """
    p = logalpha.shape[0]
    la = logalpha.astype(jnp.float32)

    # qz is (p,) and sample-independent -> plain JAX once (not per grid tile).
    qz = jax.nn.sigmoid(la - BETA * GAMMA_ZETA_LOGRATIO)

    if not training:
        # Deterministic gate; never reads or generates uniforms.
        z_det = jnp.clip(jax.nn.sigmoid(la) * ZG + GAMMA, 0.0, 1.0)
        z = jnp.broadcast_to(z_det[None, :], (repeat, p)).astype(out_dtype)
        return z, qz

    # ---- training path: Pallas kernel ----
    if u is None:
        if key is None:
            key = jax.random.PRNGKey(0)
        u = jax.random.uniform(key, (repeat, p), dtype=jnp.float32,
                               minval=1e-6, maxval=1.0 - 1e-6)
    u = u.astype(jnp.float32)

    # Lane-dense folding: fold f rows into the lane dim so last dim % 128 == 0.
    f = _fold_factor(p, repeat)
    rows, width = repeat // f, p * f
    u_wide = u.reshape(rows, width)
    la_wide = jnp.tile(la, (f,)).reshape(1, width)   # matches folded row layout

    out_itemsize = jnp.dtype(out_dtype).itemsize
    tm = _row_tile(rows, width, out_itemsize)
    num_tiles = pl.cdiv(rows, tm)

    cost = pl.CostEstimate(
        flops=8 * rows * width,
        transcendentals=2 * rows * width,                    # log + exp(sigmoid)
        bytes_accessed=rows * width * 4                      # u read
        + rows * width * out_itemsize                        # z written
        + width * 4,                                         # logalpha, fetched once
    )

    z_wide = pl.pallas_call(
        _hc_train_kernel,
        out_shape=jax.ShapeDtypeStruct((rows, width), out_dtype),
        grid=(num_tiles,),
        in_specs=[
            pl.BlockSpec((1, width), lambda i: (0, 0)),      # logalpha (constant)
            pl.BlockSpec((tm, width), lambda i: (i, 0)),     # uniforms
        ],
        out_specs=pl.BlockSpec((tm, width), lambda i: (i, 0)),
        compiler_params=pltpu.CompilerParams(
            dimension_semantics=("parallel",),               # megacore shard on v7x
            vmem_limit_bytes=48 * 1024 * 1024,               # fits v7x's 64 MiB VMEM
        ),
        cost_estimate=cost,
    )(la_wide, u_wide)

    return z_wide.reshape(repeat, p), qz


def _reference(logalpha, u, *, training=True):
    """Pure-JAX reference mirroring the PyTorch forward."""
    qz = jax.nn.sigmoid(logalpha - BETA * GAMMA_ZETA_LOGRATIO)
    if training:
        s = jax.nn.sigmoid((jnp.log(u / (1.0 - u)) + logalpha[None, :]) / BETA)
        z = jnp.clip(ZG * s + GAMMA, 0.0, 1.0)
    else:
        z = jnp.clip(jax.nn.sigmoid(logalpha) * ZG + GAMMA, 0.0, 1.0)
        z = jnp.broadcast_to(z[None, :], u.shape)
    return z, qz


if __name__ == "__main__":
    p = 32        # number of gates (hidden = 32)
    repeat = 8    # number of samples

    # Deterministic parameter init, matching nn.Parameter(torch.ones(p)).
    logalpha = jnp.ones((p,), dtype=jnp.float32)

    # Deterministic uniforms for the exact-verification path.
    key = jax.random.PRNGKey(0)
    k_u, k_gen, k_big = jax.random.split(key, 3)
    u = jnp.clip(jax.random.uniform(k_u, (repeat, p), dtype=jnp.float32),
                 1e-6, 1.0 - 1e-6)

    # 1) Training forward, external u -> exact check against the reference.
    z_u, qz = hard_concrete_sampler(logalpha, repeat, training=True, u=u)
    z_u = jax.block_until_ready(z_u)
    qz = jax.block_until_ready(qz)
    z_ref_t, qz_ref = _reference(logalpha, u, training=True)
    assert z_u.shape == (repeat, p) and qz.shape == (p,)
    assert jnp.allclose(z_u, z_ref_t, atol=1e-5, rtol=1e-5)
    assert jnp.allclose(qz, qz_ref, atol=1e-6, rtol=1e-6)

    # 2) Training forward, wrapper-generated uniforms (production sampling path).
    z_rng, qz2 = hard_concrete_sampler(logalpha, repeat, key=k_gen, training=True)
    z_rng = jax.block_until_ready(z_rng)
    assert z_rng.shape == (repeat, p)
    assert bool(jnp.all((z_rng >= 0.0) & (z_rng <= 1.0)))
    assert bool(jnp.std(z_rng) > 0.0)            # actual samples, not a constant
    assert jnp.allclose(qz2, qz_ref, atol=1e-6, rtol=1e-6)

    # 3) Eval forward (deterministic gate, computed without any uniforms).
    z_eval, qz3 = hard_concrete_sampler(logalpha, repeat, training=False)
    z_eval = jax.block_until_ready(z_eval)
    z_ref_e, _ = _reference(logalpha, u, training=False)
    assert jnp.allclose(z_eval, z_ref_e, atol=1e-6, rtol=1e-6)
    assert jnp.allclose(qz3, qz_ref, atol=1e-6, rtol=1e-6)

    # 4) Slightly larger case to exercise multi-tile grid (rows=16 -> 2 tiles).
    repeat_big = 64
    u_big = jnp.clip(jax.random.uniform(k_big, (repeat_big, p), dtype=jnp.float32),
                     1e-6, 1.0 - 1e-6)
    z_big, qz4 = hard_concrete_sampler(logalpha, repeat_big, training=True, u=u_big)
    z_big = jax.block_until_ready(z_big)
    z_ref_big, _ = _reference(logalpha, u_big, training=True)
    assert z_big.shape == (repeat_big, p)
    assert jnp.allclose(z_big, z_ref_big, atol=1e-5, rtol=1e-5)
    assert jnp.allclose(qz4, qz_ref, atol=1e-6, rtol=1e-6)

    print("KERNEL_OK")
</pallas_src>

<mosaic_0001>
module attributes {stable_mosaic.version = 11 : i64} {
  func.func @_hc_train_kernel(%arg0: i32, %arg1: memref<1x128xf32, #tpu.memory_space<vmem>>, %arg2: memref<2x128xf32, #tpu.memory_space<vmem>>, %arg3: memref<2x128xf32, #tpu.memory_space<vmem>>) attributes {dimension_semantics = [#tpu.dimension_semantics<parallel>], iteration_bounds = array<i64: 1>, scalar_prefetch = 0 : i64, scratch_operands = 0 : i64, tpu.core_type = #tpu.core_type<tc>, window_params = [{pipeline_mode = #tpu.pipeline_mode<synchronous>, transform_indices = @transform_0, window_bounds = array<i64: 1, 128>}, {transform_indices = @transform_1, window_bounds = array<i64: 2, 128>}, {transform_indices = @transform_2, window_bounds = array<i64: 2, 128>}]} {
    %c0 = arith.constant 0 : index
    %c0_0 = arith.constant 0 : index
    %0 = vector.load %arg2[%c0, %c0_0] : memref<2x128xf32, #tpu.memory_space<vmem>>, vector<2x128xf32>
    %cst = arith.constant 1.000000e+00 : f32
    %1 = vector.broadcast %cst : f32 to vector<2x128xf32>
    %2 = arith.subf %1, %0 : vector<2x128xf32>
    %3 = arith.divf %0, %2 : vector<2x128xf32>
    %4 = math.log %3 : vector<2x128xf32>
    %c0_1 = arith.constant 0 : index
    %c0_2 = arith.constant 0 : index
    %5 = vector.load %arg1[%c0_1, %c0_2] : memref<1x128xf32, #tpu.memory_space<vmem>>, vector<1x128xf32>
    %6 = vector.broadcast %5 : vector<1x128xf32> to vector<2x128xf32>
    %7 = arith.addf %4, %6 : vector<2x128xf32>
    %cst_3 = arith.constant 0.666666686 : f32
    %8 = vector.broadcast %cst_3 : f32 to vector<2x128xf32>
    %9 = arith.divf %7, %8 : vector<2x128xf32>
    %10 = arith.negf %9 : vector<2x128xf32>
    %11 = math.exp %10 : vector<2x128xf32>
    %cst_4 = arith.constant 1.000000e+00 : f32
    %12 = vector.broadcast %cst_4 : f32 to vector<2x128xf32>
    %13 = arith.addf %12, %11 : vector<2x128xf32>
    %14 = arith.divf %12, %13 : vector<2x128xf32>
    %cst_5 = arith.constant 1.200000e+00 : f32
    %15 = vector.broadcast %cst_5 : f32 to vector<2x128xf32>
    %16 = arith.mulf %15, %14 : vector<2x128xf32>
    %cst_6 = arith.constant -1.000000e-01 : f32
    %17 = vector.broadcast %cst_6 : f32 to vector<2x128xf32>
    %18 = arith.addf %16, %17 : vector<2x128xf32>
    %cst_7 = arith.constant 0.000000e+00 : f32
    %cst_8 = arith.constant 1.000000e+00 : f32
    %19 = vector.broadcast %cst_7 : f32 to vector<2x128xf32>
    %20 = arith.maximumf %19, %18 : vector<2x128xf32>
    %21 = vector.broadcast %cst_8 : f32 to vector<2x128xf32>
    %22 = arith.minimumf %21, %20 : vector<2x128xf32>
    %c0_9 = arith.constant 0 : index
    %c0_10 = arith.constant 0 : index
    %23 = vector.load %arg3[%c0_9, %c0_10] : memref<2x128xf32, #tpu.memory_space<vmem>>, vector<2x128xf32>
    tpu.vector_store %arg3[%c0_9, %c0_10], %22 {strides = array<i32>} : memref<2x128xf32, #tpu.memory_space<vmem>>, vector<2x128xf32>,
    return
  }
  func.func @transform_0(%arg0: i32) -> (i32, i32) {
    %c0_i32 = arith.constant 0 : i32
    %c0_i32_0 = arith.constant 0 : i32
    %c0_i32_1 = arith.constant 0 : i32
    return %c0_i32, %c0_i32_0 : i32, i32
  }
  func.func @transform_1(%arg0: i32) -> (i32, i32) {
    %c0_i32 = arith.constant 0 : i32
    %c0_i32_0 = arith.constant 0 : i32
    return %arg0, %c0_i32 : i32, i32
  }
  func.func @transform_2(%arg0: i32) -> (i32, i32) {
    %c0_i32 = arith.constant 0 : i32
    %c0_i32_0 = arith.constant 0 : i32
    return %arg0, %c0_i32 : i32, i32
  }
}

</mosaic_0001>

<bundles_post_ra>
// kernel: tpu_custom_call.1
= control target key start
LH: loop header
LB: loop body
LE: loop exit
PB: predicated region body
PF: predicated region fallthrough
CT: control target
= control target key end

     0   :  { %7 = vsyncpa [#allocation3], 0  ;;  %s170_s0 = inlined_call_operand.hbm [shape: f32[1,128], index: 0, kind: input, shape index: {}]   ;;  %s171_s1 = inlined_call_operand.vmem [shape: f32[2,128], index: 1, kind: input, shape index: {}]   ;;  %s172_s2 = inlined_call_operand.hbm [shape: f32[2,128], index: 2, kind: output, shape index: {}]  }
   0x1   :  { %8 = vsyncpa [#allocation4], 0  ;;  %s126_s9 = smov [#allocation2]   ;;  %s78_s13 = scalar_lea.hbm %s170_s0, 16 }
   0x2   :  { %s15_s10 = sshll.u32 %s126_s9, 4  ;;  %p79_p0 = scmp.ne.s32.totalorder %s170_s0, %s78_s13  ;;  %s16_s10 = int_to_ptr.vmem [resolvable:$true] %s15_s10 }
   0x3   :  { %p82_p1 = scmp.lt.u32.totalorder %s78_s13, %s170_s0 }
   0x5   :  { %p84_p2 = pnand %p82_p1, %p79_p0 }
   0x7   :  { %87 = shalt.err (!%p84_p2)
}
   0x8   :  { %s88_s18 = scalar_lea.vmem %s16_s10, 16  ;;  %s92_s19 = scalar_lea.vmem %s16_s10, 32 }
   0x9   :  { %p89_p3 = scmp.ne.s32.totalorder %s16_s10, %s88_s18  ;;  %p93_p4 = scmp.lt.s32.totalorder %s16_s10, %s16_s10 }
   0xa   :  { %p94_p5 = scmp.lt.s32.totalorder %s92_s19, %s88_s18 }
   0xc   :  { %p95_p6 = por %p94_p5, %p93_p4 }
   0xe   :  { %p96_p7 = pnand %p95_p6, %p89_p3 }
  0x10   :  { %99 = shalt.err (!%p96_p7)
}
  0x11   :  { %18 = dma.hbm_to_vmem [thread:$0]  %s170_s0, 16, %s16_s10, [#allocation3]  }
  0x12   :  { %122 = dma.done.wait [#allocation3], 16  }
  0x13   :  { %123 = vsyncadd [#allocation3], 4294967280  ;;  %v24_v0 = vld [vmem:[%s171_s1] sm:$0x3]  ;;  %v66_v5 = vld [vmem:[#allocation2] ss:$0 sm:$0xff] }
  0x14   :  { %v25_v1 = vsub.f32 1.0, %v24_v0  ;;  %s127_s0 = smov [#allocation5]  }
  0x15   :  { %s57_s1 = sshll.u32 %s127_s0, 4  ;;  %s58_s1 = int_to_ptr.vmem [resolvable:$true] %s57_s1 }
  0x16   :  { %70 = vrcp.f32 %v25_v1  ;;  %s100_s24 = scalar_lea.vmem %s58_s1, 32  ;;  %p105_p9 = scmp.lt.s32.totalorder %s58_s1, %s58_s1 }
  0x17   :  { %p101_p8 = scmp.ne.s32.totalorder %s58_s1, %s100_s24  ;;  %p106_p10 = scmp.lt.s32.totalorder %s100_s24, %s100_s24 }
  0x19   :  { %p107_p11 = por %p106_p10, %p105_p9 }
  0x1b   :  { %p108_p12 = pnand %p107_p11, %p101_p8 }
  0x20   :  { %v71_v2 = vpop.eup %70 }
  0x21   :  { %v27_v3 = vmul.f32 %v71_v2, %v24_v0 }
  0x23   :  { %72 = vlog2.f32 %v27_v3 }
  0x2d   :  { %v73_v4 = vpop.eup %72 }
  0x2e   :  { %v29_v6 = vmul.f32 0.6931472, %v73_v4 }
  0x30   :  { %v37_v7 = vadd.f32 %v66_v5, %v29_v6 }
  0x32   :  { %v67_v8 = vmul.f32 -1.5, %v37_v7 }
  0x34   :  { %v41_v9 = vmul.f32 1.442695, %v67_v8 }
  0x36   :  { %74 = vpow2.f32 %v41_v9 }
  0x40   :  { %v75_v10 = vpop.eup %74 }
  0x41   :  { %v43_v11 = vadd.f32 1.0, %v75_v10 }
  0x43   :  { %76 = vrcp.f32 %v43_v11 }
  0x4d   :  { %v77_v12 = vpop.eup %76 }
  0x4e   :  { %v46_v13 = vmul.f32 1.2, %v77_v12 }
  0x50   :  { %v47_v14 = vadd.f32 -0.1, %v46_v13 }
  0x52   :  { %v48_v15 = vmax.f32 %v47_v14, 0.0 }
  0x54   :  { %v49_v16 = vmin.f32 %v48_v15, 1.0 }
  0x56   :  { %50 = vst [vmem:[#allocation5] sm:$0x3] %v49_v16 }
  0x57   :  { %111 = shalt.err (!%p108_p12)
}
  0x58   :  { %s112_s27 = scalar_lea.hbm %s172_s2, 32 }
  0x59   :  { %p113_p13 = scmp.ne.s32.totalorder %s172_s2, %s112_s27  ;;  %p116_p0 = scmp.lt.u32.totalorder %s112_s27, %s172_s2 }
  0x5b   :  { %p118_p1 = pnand %p116_p0, %p113_p13 }
  0x5d   :  { %121 = shalt.err (!%p118_p1)
}
  0x5e   :  { %60 = dma.vmem_to_hbm [thread:$0]  %s58_s1, 32, %s172_s2, [#allocation4]  }
  0x5f   :  { %124 = dma.done.wait [#allocation4], 32  }
  0x60   :  { %125 = vsyncadd [#allocation4], 4294967264 }
  0x61   :  { %64 = vsyncpa [#allocation3], 1 }
  0x62   :  { %65 = vsyncpa [#allocation4], 1 }

</bundles_post_ra>
